<compile_context>
chip_gen: v7x
topology: tpu7x:2x2x1
jax: 0.10.0
libtpu: 0.0.40
codegen_flags: <defaults>
</compile_context>

<pallas_src>
import functools

import jax
import jax.numpy as jnp
from jax.experimental import pallas as pl
from jax.experimental.pallas import tpu as pltpu

INPUT_SIZE = 80
HIDDEN1 = 30
HIDDEN2 = 30
NUM_CLASSES = 7
OUT_WIDTH = 8            # NUM_CLASSES rounded up -> narrow, legal output block
TARGET_GRID_STEPS = 8    # >= 3-4 steps per TensorCore on v7x megacore
MIN_TILE_B = 512         # amortize ~0.35us per-grid-step overhead
MAX_TILE_B = 4096        # a few MiB of VMEM; comfortable on v5e/v6e/v7x


def _cdiv(a, b):
    return -(-a // b)


def _round_up(n, m):
    return ((n + m - 1) // m) * m


def _mlp_kernel(x_ref, w1_ref, b1_ref, w2_ref, b2_ref, w3_ref, b3_ref, o_ref):
    """Fused 3-layer MLP for one batch tile, entirely in VMEM.

    x is read as f32 from HBM and cast to bf16 on the VPU (plenty of slack);
    weights are bf16; all matmuls accumulate in f32 on the MXU; bias-add and
    ReLU stay f32.
    """
    x = x_ref[...].astype(jnp.bfloat16)                                # (tb, 80)

    h1 = jnp.dot(x, w1_ref[...], preferred_element_type=jnp.float32)   # (tb, 30)
    h1 = jnp.maximum(h1 + b1_ref[...], 0.0).astype(jnp.bfloat16)       # ReLU

    h2 = jnp.dot(h1, w2_ref[...], preferred_element_type=jnp.float32)  # (tb, 30)
    h2 = jnp.maximum(h2 + b2_ref[...], 0.0).astype(jnp.bfloat16)       # ReLU

    out = jnp.dot(h2, w3_ref[...], preferred_element_type=jnp.float32)  # (tb, 8)
    o_ref[...] = (out + b3_ref[...]).astype(o_ref.dtype)


@functools.partial(jax.jit, static_argnames=("tile_b",))
def _mlp_forward_impl(x, w1b, b1, w2b, b2, w3p, b3p, *, tile_b):
    B, _ = x.shape
    grid = (_cdiv(B, tile_b),)   # ragged last block handled by Pallas

    # Batch axis is tiled; weights/biases use constant block indices so they
    # are DMA'd once and stay VMEM-resident across the whole grid.
    in_specs = [
        pl.BlockSpec((tile_b, INPUT_SIZE), lambda i: (i, 0)),        # x (f32)
        pl.BlockSpec((INPUT_SIZE, HIDDEN1), lambda i: (0, 0)),       # w1 (bf16)
        pl.BlockSpec((1, HIDDEN1), lambda i: (0, 0)),                # b1 (f32)
        pl.BlockSpec((HIDDEN1, HIDDEN2), lambda i: (0, 0)),          # w2 (bf16)
        pl.BlockSpec((1, HIDDEN2), lambda i: (0, 0)),                # b2 (f32)
        pl.BlockSpec((HIDDEN2, OUT_WIDTH), lambda i: (0, 0)),        # w3 padded
        pl.BlockSpec((1, OUT_WIDTH), lambda i: (0, 0)),              # b3 padded
    ]
    out_specs = pl.BlockSpec((tile_b, OUT_WIDTH), lambda i: (i, 0))

    weight_elems = (INPUT_SIZE * HIDDEN1 + HIDDEN1 * HIDDEN2 + HIDDEN2 * OUT_WIDTH)
    cost = pl.CostEstimate(
        flops=2 * B * (INPUT_SIZE * HIDDEN1 + HIDDEN1 * HIDDEN2 + HIDDEN2 * OUT_WIDTH),
        transcendentals=0,
        bytes_accessed=(B * INPUT_SIZE * 4            # x read (f32)
                        + B * OUT_WIDTH * 4           # out write (f32)
                        + weight_elems * 2            # bf16 weights
                        + (HIDDEN1 + HIDDEN2 + OUT_WIDTH) * 4),  # f32 biases
    )

    out = pl.pallas_call(
        _mlp_kernel,
        out_shape=jax.ShapeDtypeStruct((B, OUT_WIDTH), jnp.float32),
        grid_spec=pltpu.PrefetchScalarGridSpec(
            num_scalar_prefetch=0,
            grid=grid,
            in_specs=in_specs,
            out_specs=out_specs,
        ),
        compiler_params=pltpu.CompilerParams(
            dimension_semantics=("parallel",),
        ),
        cost_estimate=cost,
    )(x, w1b, b1, w2b, b2, w3p, b3p)

    return out[:, :NUM_CLASSES]


def prepare_params(params):
    """One-time conversion of f32 params into kernel format (do this OUTSIDE
    the per-call forward): bf16 (in, out) weights; f32 (1, out) biases; the
    last layer zero-padded to OUT_WIDTH lanes."""
    w1, b1, w2, b2, w3, b3 = params
    w1b = jnp.asarray(w1, jnp.bfloat16)
    w2b = jnp.asarray(w2, jnp.bfloat16)
    w3p = jnp.zeros((HIDDEN2, OUT_WIDTH), jnp.bfloat16)
    w3p = w3p.at[:, :NUM_CLASSES].set(jnp.asarray(w3, jnp.bfloat16))
    b1f = jnp.asarray(b1, jnp.float32).reshape(1, HIDDEN1)
    b2f = jnp.asarray(b2, jnp.float32).reshape(1, HIDDEN2)
    b3p = jnp.zeros((1, OUT_WIDTH), jnp.float32)
    b3p = b3p.at[:, :NUM_CLASSES].set(jnp.asarray(b3, jnp.float32).reshape(1, NUM_CLASSES))
    return (w1b, b1f, w2b, b2f, w3p, b3p)


def _default_tile_b(B):
    # ~TARGET_GRID_STEPS grid steps, large enough to amortize per-step
    # overhead, small enough to pipeline, never larger than the batch.
    t = _round_up(_cdiv(B, TARGET_GRID_STEPS), 16)
    t = min(max(t, MIN_TILE_B), MAX_TILE_B)
    t = min(t, _round_up(B, 8))
    return max(8, t)


def mlp_forward(x, prepared_params, *, tile_b=None):
    """x: (B, 80) float32 -> logits (B, 7) float32."""
    B, F = x.shape
    assert F == INPUT_SIZE
    if tile_b is None:
        tile_b = _default_tile_b(B)
    tile_b = max(8, _round_up(int(tile_b), 8))   # f32 sublane multiple
    w1b, b1, w2b, b2, w3p, b3p = prepared_params
    return _mlp_forward_impl(x, w1b, b1, w2b, b2, w3p, b3p, tile_b=tile_b)


def init_params(key):
    """Deterministic init mimicking PyTorch's default Linear init:
    U(-1/sqrt(fan_in), 1/sqrt(fan_in)) for both weight and bias."""
    def linear(key, fan_in, fan_out):
        kw, kb = jax.random.split(key)
        bound = 1.0 / jnp.sqrt(fan_in)
        w = jax.random.uniform(kw, (fan_in, fan_out), jnp.float32, -bound, bound)
        b = jax.random.uniform(kb, (1, fan_out), jnp.float32, -bound, bound)
        return w, b

    k1, k2, k3 = jax.random.split(key, 3)
    w1, b1 = linear(k1, INPUT_SIZE, HIDDEN1)
    w2, b2 = linear(k2, HIDDEN1, HIDDEN2)
    w3, b3 = linear(k3, HIDDEN2, NUM_CLASSES)
    return (w1, b1, w2, b2, w3, b3)


def reference_forward_f32(x, params):
    """Plain-JAX f32 reference identical to the PyTorch forward pass."""
    w1, b1, w2, b2, w3, b3 = params
    h1 = jnp.maximum(x @ w1 + b1, 0.0)
    h2 = jnp.maximum(h1 @ w2 + b2, 0.0)
    return h2 @ w3 + b3


def reference_forward_bf16(x, params):
    """Plain-JAX reference mirroring the kernel's bf16/f32 mixed precision."""
    w1, b1, w2, b2, w3, b3 = params
    xb = x.astype(jnp.bfloat16)
    h1 = jnp.dot(xb, w1.astype(jnp.bfloat16), preferred_element_type=jnp.float32)
    h1 = jnp.maximum(h1 + b1, 0.0).astype(jnp.bfloat16)
    h2 = jnp.dot(h1, w2.astype(jnp.bfloat16), preferred_element_type=jnp.float32)
    h2 = jnp.maximum(h2 + b2, 0.0).astype(jnp.bfloat16)
    return jnp.dot(h2, w3.astype(jnp.bfloat16), preferred_element_type=jnp.float32) + b3


if __name__ == "__main__":
    key = jax.random.PRNGKey(0)
    k_params, k_x1, k_x2 = jax.random.split(key, 3)
    params = init_params(k_params)
    kparams = prepare_params(params)   # one-time weight prep (hoisted out of forward)

    # Small demo batch (single grid step).
    B = 8
    x = jax.random.normal(k_x1, (B, INPUT_SIZE), dtype=jnp.float32)
    out = jax.block_until_ready(mlp_forward(x, kparams))
    assert out.shape == (B, NUM_CLASSES)

    ref_q = reference_forward_bf16(x, params)   # same mixed precision as kernel
    ref_f = reference_forward_f32(x, params)    # exact PyTorch-equivalent math
    assert jnp.allclose(out, ref_q, atol=2e-2, rtol=2e-2), "mismatch vs bf16 reference"
    assert float(jnp.max(jnp.abs(out - ref_f))) < 0.25, "bf16 quantization error too large"

    # Ragged batch exercising the multi-step grid with a partial last block.
    B2 = 200
    x2 = jax.random.normal(k_x2, (B2, INPUT_SIZE), dtype=jnp.float32)
    out2 = jax.block_until_ready(mlp_forward(x2, kparams, tile_b=64))
    assert out2.shape == (B2, NUM_CLASSES)
    ref2 = reference_forward_bf16(x2, params)
    assert jnp.allclose(out2, ref2, atol=2e-2, rtol=2e-2), "mismatch on ragged batch"

    # Default tile selection path (single ragged block, tile_b == round_up(B,8)).
    out3 = jax.block_until_ready(mlp_forward(x2, kparams))
    assert out3.shape == (B2, NUM_CLASSES)
    assert jnp.allclose(out3, ref2, atol=2e-2, rtol=2e-2), "mismatch with default tile"

    print("KERNEL_OK")
</pallas_src>

<mosaic_0001>
module attributes {stable_mosaic.version = 11 : i64} {
  func.func @_mlp_kernel(%arg0: i32, %arg1: memref<8x80xf32, #tpu.memory_space<vmem>>, %arg2: memref<80x30xbf16, #tpu.memory_space<vmem>>, %arg3: memref<1x30xf32, #tpu.memory_space<vmem>>, %arg4: memref<30x30xbf16, #tpu.memory_space<vmem>>, %arg5: memref<1x30xf32, #tpu.memory_space<vmem>>, %arg6: memref<30x8xbf16, #tpu.memory_space<vmem>>, %arg7: memref<1x8xf32, #tpu.memory_space<vmem>>, %arg8: memref<8x8xf32, #tpu.memory_space<vmem>>) attributes {dimension_semantics = [#tpu.dimension_semantics<parallel>], iteration_bounds = array<i64: 1>, scalar_prefetch = 0 : i64, scratch_operands = 0 : i64, tpu.core_type = #tpu.core_type<tc>, window_params = [{transform_indices = @transform_0, window_bounds = array<i64: 8, 80>}, {pipeline_mode = #tpu.pipeline_mode<synchronous>, transform_indices = @transform_1, window_bounds = array<i64: 80, 30>}, {pipeline_mode = #tpu.pipeline_mode<synchronous>, transform_indices = @transform_2, window_bounds = array<i64: 1, 30>}, {pipeline_mode = #tpu.pipeline_mode<synchronous>, transform_indices = @transform_3, window_bounds = array<i64: 30, 30>}, {pipeline_mode = #tpu.pipeline_mode<synchronous>, transform_indices = @transform_4, window_bounds = array<i64: 1, 30>}, {pipeline_mode = #tpu.pipeline_mode<synchronous>, transform_indices = @transform_5, window_bounds = array<i64: 30, 8>}, {pipeline_mode = #tpu.pipeline_mode<synchronous>, transform_indices = @transform_6, window_bounds = array<i64: 1, 8>}, {transform_indices = @transform_7, window_bounds = array<i64: 8, 8>}]} {
    %c0 = arith.constant 0 : index
    %c0_0 = arith.constant 0 : index
    %0 = vector.load %arg1[%c0, %c0_0] : memref<8x80xf32, #tpu.memory_space<vmem>>, vector<8x80xf32>
    %1 = arith.truncf %0 : vector<8x80xf32> to vector<8x80xbf16>
    %c0_1 = arith.constant 0 : index
    %c0_2 = arith.constant 0 : index
    %2 = vector.load %arg2[%c0_1, %c0_2] : memref<80x30xbf16, #tpu.memory_space<vmem>>, vector<80x30xbf16>
    %cst = arith.constant dense<0.000000e+00> : vector<8x30xf32>
    %3 = tpu.matmul %1, %2, %cst {dimension_numbers = #tpu.dot_dimension_numbers<[1], [0], [0], [1], [0, 0, 1, 1], [], []>} : vector<8x80xbf16>, vector<80x30xbf16>, vector<8x30xf32> -> vector<8x30xf32>
    %c0_3 = arith.constant 0 : index
    %c0_4 = arith.constant 0 : index
    %4 = vector.load %arg3[%c0_3, %c0_4] : memref<1x30xf32, #tpu.memory_space<vmem>>, vector<1x30xf32>
    %5 = vector.broadcast %4 : vector<1x30xf32> to vector<8x30xf32>
    %6 = arith.addf %3, %5 : vector<8x30xf32>
    %cst_5 = arith.constant 0.000000e+00 : f32
    %7 = vector.broadcast %cst_5 : f32 to vector<8x30xf32>
    %8 = arith.maximumf %6, %7 : vector<8x30xf32>
    %9 = arith.truncf %8 : vector<8x30xf32> to vector<8x30xbf16>
    %c0_6 = arith.constant 0 : index
    %c0_7 = arith.constant 0 : index
    %10 = vector.load %arg4[%c0_6, %c0_7] : memref<30x30xbf16, #tpu.memory_space<vmem>>, vector<30x30xbf16>
    %cst_8 = arith.constant dense<0.000000e+00> : vector<8x30xf32>
    %11 = tpu.matmul %9, %10, %cst_8 {dimension_numbers = #tpu.dot_dimension_numbers<[1], [0], [0], [1], [0, 0, 1, 1], [], []>} : vector<8x30xbf16>, vector<30x30xbf16>, vector<8x30xf32> -> vector<8x30xf32>
    %c0_9 = arith.constant 0 : index
    %c0_10 = arith.constant 0 : index
    %12 = vector.load %arg5[%c0_9, %c0_10] : memref<1x30xf32, #tpu.memory_space<vmem>>, vector<1x30xf32>
    %13 = vector.broadcast %12 : vector<1x30xf32> to vector<8x30xf32>
    %14 = arith.addf %11, %13 : vector<8x30xf32>
    %cst_11 = arith.constant 0.000000e+00 : f32
    %15 = vector.broadcast %cst_11 : f32 to vector<8x30xf32>
    %16 = arith.maximumf %14, %15 : vector<8x30xf32>
    %17 = arith.truncf %16 : vector<8x30xf32> to vector<8x30xbf16>
    %c0_12 = arith.constant 0 : index
    %c0_13 = arith.constant 0 : index
    %18 = vector.load %arg6[%c0_12, %c0_13] : memref<30x8xbf16, #tpu.memory_space<vmem>>, vector<30x8xbf16>
    %cst_14 = arith.constant dense<0.000000e+00> : vector<8x8xf32>
    %19 = tpu.matmul %17, %18, %cst_14 {dimension_numbers = #tpu.dot_dimension_numbers<[1], [0], [0], [1], [0, 0, 1, 1], [], []>} : vector<8x30xbf16>, vector<30x8xbf16>, vector<8x8xf32> -> vector<8x8xf32>
    %c0_15 = arith.constant 0 : index
    %c0_16 = arith.constant 0 : index
    %20 = vector.load %arg7[%c0_15, %c0_16] : memref<1x8xf32, #tpu.memory_space<vmem>>, vector<1x8xf32>
    %21 = vector.broadcast %20 : vector<1x8xf32> to vector<8x8xf32>
    %22 = arith.addf %19, %21 : vector<8x8xf32>
    %c0_17 = arith.constant 0 : index
    %c0_18 = arith.constant 0 : index
    %23 = vector.load %arg8[%c0_17, %c0_18] : memref<8x8xf32, #tpu.memory_space<vmem>>, vector<8x8xf32>
    tpu.vector_store %arg8[%c0_17, %c0_18], %22 {strides = array<i32>} : memref<8x8xf32, #tpu.memory_space<vmem>>, vector<8x8xf32>,
    return
  }
  func.func @transform_0(%arg0: i32) -> (i32, i32) {
    %c0_i32 = arith.constant 0 : i32
    %c0_i32_0 = arith.constant 0 : i32
    return %arg0, %c0_i32 : i32, i32
  }
  func.func @transform_1(%arg0: i32) -> (i32, i32) {
    %c0_i32 = arith.constant 0 : i32
    %c0_i32_0 = arith.constant 0 : i32
    %c0_i32_1 = arith.constant 0 : i32
    return %c0_i32, %c0_i32_0 : i32, i32
  }
  func.func @transform_2(%arg0: i32) -> (i32, i32) {
    %c0_i32 = arith.constant 0 : i32
    %c0_i32_0 = arith.constant 0 : i32
    %c0_i32_1 = arith.constant 0 : i32
    return %c0_i32, %c0_i32_0 : i32, i32
  }
  func.func @transform_3(%arg0: i32) -> (i32, i32) {
    %c0_i32 = arith.constant 0 : i32
    %c0_i32_0 = arith.constant 0 : i32
    %c0_i32_1 = arith.constant 0 : i32
    return %c0_i32, %c0_i32_0 : i32, i32
  }
  func.func @transform_4(%arg0: i32) -> (i32, i32) {
    %c0_i32 = arith.constant 0 : i32
    %c0_i32_0 = arith.constant 0 : i32
    %c0_i32_1 = arith.constant 0 : i32
    return %c0_i32, %c0_i32_0 : i32, i32
  }
  func.func @transform_5(%arg0: i32) -> (i32, i32) {
    %c0_i32 = arith.constant 0 : i32
    %c0_i32_0 = arith.constant 0 : i32
    %c0_i32_1 = arith.constant 0 : i32
    return %c0_i32, %c0_i32_0 : i32, i32
  }
  func.func @transform_6(%arg0: i32) -> (i32, i32) {
    %c0_i32 = arith.constant 0 : i32
    %c0_i32_0 = arith.constant 0 : i32
    %c0_i32_1 = arith.constant 0 : i32
    return %c0_i32, %c0_i32_0 : i32, i32
  }
  func.func @transform_7(%arg0: i32) -> (i32, i32) {
    %c0_i32 = arith.constant 0 : i32
    %c0_i32_0 = arith.constant 0 : i32
    return %arg0, %c0_i32 : i32, i32
  }
}

</mosaic_0001>

<bundles_post_ra>
// kernel: _mlp_forward_impl.1
= control target key start
LH: loop header
LB: loop body
LE: loop exit
PB: predicated region body
PF: predicated region fallthrough
CT: control target
= control target key end

     0   :  { %v372_v1 = vmov 0.0   ;;  %vm373_vm0 = vmmov 0   ;;  %s473_s0 = inlined_call_operand.vmem [shape: f32[8,80], index: 0, kind: input, shape index: {}]   ;;  %s474_s1 = inlined_call_operand.vmem [shape: bf16[80,30], index: 1, kind: input, shape index: {}]   ;;  %s475_s2 = inlined_call_operand.vmem [shape: f32[1,30], index: 2, kind: input, shape index: {}]   ;;  %s476_s3 = inlined_call_operand.vmem [shape: bf16[30,30], index: 3, kind: input, shape index: {}]   ;;  %s477_s4 = inlined_call_operand.vmem [shape: f32[1,30], index: 4, kind: input, shape index: {}]   ;;  %s478_s5 = inlined_call_operand.vmem [shape: bf16[30,8], index: 5, kind: input, shape index: {}]   ;;  %s479_s6 = inlined_call_operand.vmem [shape: f32[1,8], index: 6, kind: input, shape index: {}]   ;;  %s480_s7 = inlined_call_operand.hbm [shape: f32[8,8], index: 7, kind: output, shape index: {}]  }
   0x1   :  { %v339_v0 = vld [vmem:[%s474_s1] sm:$0xff]   ;;  %306 = vmatprep.subr.bf16.mxu0 %v372_v1  ;;  %320 = vmatprep.subr.bf16.mxu1 %v372_v1  ;;  %v340_v2 = vld [vmem:[%s474_s1 + $0x8] sm:$0xff]   ;;  %v341_v3 = vld [vmem:[%s474_s1 + $0x10] sm:$0xff]  }
   0x2   :  { %307 = vmatpush3.bf16.msra.mxu0 %v339_v0  ;;  %316 = vmatprep.mubr.msk.bf16.mxu0 %vm373_vm0, %v372_v1 }
   0x3   :  { %308 = vmatprep.subr.bf16.mxu0 %v372_v1  ;;  %324 = vmatprep.mubr.msk.bf16.mxu1 %vm373_vm0, %v372_v1 }
   0x6   :  { %309 = vmatpush3.bf16.msra.mxu0 %v340_v2 }
   0x7   :  { %310 = vmatprep.subr.bf16.mxu0 %v372_v1 }
   0x8   :  { %12 = vsyncpa [#allocation3], 0  ;;  %v342_v4 = vld [vmem:[%s474_s1 + $0x18] sm:$0xff]   ;;  %v343_v5 = vld [vmem:[%s474_s1 + $0x20] sm:$0xff]   ;;  %vm77_vm1 = vcmask 654336   ;;  %vm149_vm2 = vcmask 1046528  }
   0x9   :  { %v28_v6 = vld [vmem:[%s473_s0] sm:$0xff]  ;;  %v345_v9 = vld [vmem:[%s476_s3 + $0x8] sm:$0x7f]   ;;  %vm145_vm3 = vcmask 244736   ;;  %vm263_vm4 = vcmask 64512  }
   0xa   :  { %311 = vmatpush3.bf16.msra.mxu0 %v341_v3  ;;  %v29_v7 = vpack.c.bf16 %v28_v6, %v28_v6  ;;  %v344_v8 = vld [vmem:[%s476_s3] sm:$0xff]   ;;  %v151_v10 = vsel %vm149_vm2, %v345_v9, 0  ;;  %v347_v20 = vld [vmem:[%s478_s5 + $0x8] sm:$0x7f]  }
   0xb   :  { %312 = vmatprep.subr.bf16.mxu0 %v372_v1  ;;  %321 = vmatpush3.bf16.msra.mxu1 %v344_v8  ;;  %v279_v11 = vld [vmem:[%s475_s2] ss:$0 sm:$0xff]  ;;  %v221_v21 = vsel %vm149_vm2, %v347_v20, 0 }
   0xc   :  { %322 = vmatprep.subr.bf16.mxu1 %v372_v1  ;;  %v346_v18 = vld [vmem:[%s478_s5] sm:$0xff]   ;;  %s374_s5 = smov [#allocation2]  }
   0xd   :  { %v286_v22 = vld [vmem:[%s477_s4] ss:$0 sm:$0xff]  ;;  %s271_s23 = sshll.u32 %s374_s5, 4  ;;  %s272_s23 = int_to_ptr.vmem [resolvable:$true] %s271_s23 }
   0xe   :  { %313 = vmatpush3.bf16.msra.mxu0 %v342_v4  ;;  %v290_v30 = vld [vmem:[%s479_s6] ss:$0 sm:$0xff]  ;;  %s348_s4 = scalar_lea.vmem %s272_s23, 128  ;;  %p353_p1 = scmp.lt.s32.totalorder %s272_s23, %s272_s23 }
   0xf   :  { %314 = vmatprep.subr.bf16.mxu0 %v372_v1  ;;  %323 = vmatpush3.bf16.msra.mxu1 %v151_v10  ;;  %p349_p0 = scmp.ne.s32.totalorder %s272_s23, %s348_s4  ;;  %p354_p2 = scmp.lt.s32.totalorder %s348_s4, %s348_s4 }
  0x10   :  { %328 = vmatprep.subr.bf16.mxu1 %v372_v1 }
  0x11   :  { %p355_p3 = por %p354_p2, %p353_p1 }
  0x12   :  { %315 = vmatpush3.bf16.msra.mxu0 %v343_v5 }
  0x13   :  { %p356_p4 = pnand %p355_p3, %p349_p0 }
  0x15   :  { %317 = vmatmul.mubr.msk.bf16.vlgmr.msra.gmra.mrb[0].mxu0 %vm77_vm1, %v29_v7 }
  0xe8   :  { %v115_v12 = vpop.f32.mrb[0].mxu0 }
  0xe9   :  { %v116_v13 = vadd.f32 %v279_v11, %v115_v12  ;;  %v318_v14 = vpop.f32.mrb[1].mxu0 }
  0xea   :  { %v118_v15 = vpop.f32.mrb[2].mxu0 }
  0xeb   :  { %v121_v16 = vmax.f32 %v116_v13, 0.0  ;;  %v319_v17 = vpop.f32.mrb[3].mxu0 }
  0xed   :  { %v122_v19 = vpack.c.bf16 %v121_v16, %v121_v16 }
  0xef   :  { %325 = vmatmul.mubr.msk.bf16.vlgmr.msra.gmra.mrb[0].mxu1 %vm145_vm3, %v122_v19 }
  0xf0   :  { %329 = vmatpush3.bf16.msra.mxu1 %v346_v18  ;;  %332 = vmatprep.mubr.msk.bf16.mxu1 %vm373_vm0, %v372_v1 }
  0xf1   :  { %330 = vmatprep.subr.bf16.mxu1 %v372_v1 }
  0xf4   :  { %331 = vmatpush3.bf16.msra.mxu1 %v221_v21 }
 0x1c2   :  { %v187_v23 = vpop.f32.mrb[0].mxu1 }
 0x1c3   :  { %v188_v24 = vadd.f32 %v286_v22, %v187_v23  ;;  %v326_v25 = vpop.f32.mrb[1].mxu1 }
 0x1c4   :  { %v190_v26 = vpop.f32.mrb[2].mxu1 }
 0x1c5   :  { %v193_v27 = vmax.f32 %v188_v24, 0.0  ;;  %v327_v28 = vpop.f32.mrb[3].mxu1 }
 0x1c7   :  { %v194_v29 = vpack.c.bf16 %v193_v27, %v193_v27 }
 0x1c9   :  { %333 = vmatmul.mubr.msk.bf16.vlgmr.msra.gmra.mrb[4].mxu1 %vm145_vm3, %v194_v29 }
 0x29c   :  { %v257_v31 = vpop.f32.mrb[4].mxu1 }
 0x29d   :  { %v258_v32 = vadd.f32 %v290_v30, %v257_v31  ;;  %v334_v33 = vpop.f32.mrb[5].mxu1 }
 0x29e   :  { %v260_v34 = vpop.f32.mrb[6].mxu1 }
 0x29f   :  { %v335_v35 = vpop.f32.mrb[7].mxu1  ;;  %264 = vst.msk [vmem:[#allocation2] sm:$0xff] %vm263_vm4, %v258_v32 }
 0x2a0   :  { %359 = shalt.err (!%p356_p4)
}
 0x2a1   :  { %s360_s6 = scalar_lea.hbm %s480_s7, 128 }
 0x2a2   :  { %p361_p5 = scmp.ne.s32.totalorder %s480_s7, %s360_s6  ;;  %p364_p6 = scmp.lt.u32.totalorder %s360_s6, %s480_s7 }
 0x2a4   :  { %p366_p7 = pnand %p364_p6, %p361_p5 }
 0x2a6   :  { %369 = shalt.err (!%p366_p7)
}
 0x2a7   :  { %274 = dma.vmem_to_hbm [thread:$0]  %s272_s23, 128, %s480_s7, [#allocation3]  }
 0x2a8   :  { %370 = dma.done.wait [#allocation3], 128  }
 0x2a9   :  { %371 = vsyncadd [#allocation3], 4294967168 }
 0x2aa   :  { %278 = vsyncpa [#allocation3], 1 }

</bundles_post_ra>
